<compile_context>
chip_gen: v7x
topology: tpu7x:2x2x1
jax: 0.10.0
libtpu: 0.0.40
codegen_flags: <defaults>
</compile_context>

<pallas_src>
import functools

import jax
import jax.numpy as jnp
import numpy as np
from jax.experimental import pallas as pl
from jax.experimental.pallas import tpu as pltpu

# Deterministic 3x3 Gaussian (binomial) kernel / 16 — used only by the pure-JAX reference.
_GAUSSIAN_3x3 = (
    (1.0 / 16.0, 2.0 / 16.0, 1.0 / 16.0),
    (2.0 / 16.0, 4.0 / 16.0, 2.0 / 16.0),
    (1.0 / 16.0, 2.0 / 16.0, 1.0 / 16.0),
)


def _gmse_partial_kernel(mask_ref, pred_ref, targ_ref, out_ref, *, width, n_images,
                         b_tile):
    """One grid step: separable [1,2,1]x[1,2,1] stencil on (pred - target) for a batch
    tile whose images are flattened (H*W) along the lane axis; emits the per-lane,
    batch-reduced, un-normalized sum of squares for this tile."""
    flat = pred_ref.shape[1]

    # Linearity of the convolution: conv(p) - conv(t) == conv(p - t).  Cast in-kernel.
    d = pred_ref[...].astype(jnp.float32) - targ_ref[...].astype(jnp.float32)

    # cdiv grid: zero the contribution of out-of-range batch rows in the last block.
    if n_images % b_tile != 0:
        rows = jax.lax.broadcasted_iota(jnp.int32, (b_tile, 1), 0)
        d = jnp.where(rows < n_images - pl.program_id(0) * b_tile, d, 0.0)

    # (1, flat) f32 neighbour-validity masks (0.0 exactly where the conv's zero padding
    # applies; these also kill the cyclic wrap-around of the rolls below).
    left_ok = mask_ref[0:1, :]
    right_ok = mask_ref[1:2, :]
    up_ok = mask_ref[2:3, :]
    down_ok = mask_ref[3:4, :]

    # Row pass (lane axis): r[k] = d[k-1] + 2*d[k] + d[k+1] within each image row.
    # pltpu.roll is a cyclic XLU rotation (no block-sized temporaries / extra stores).
    r = (d + d
         + left_ok * pltpu.roll(d, shift=1, axis=1)
         + right_ok * pltpu.roll(d, shift=flat - 1, axis=1))

    # Column pass: the rows above/below are +-width positions away on the flat axis.
    c = (r + r
         + up_ok * pltpu.roll(r, shift=width, axis=1)
         + down_ok * pltpu.roll(r, shift=flat - width, axis=1))

    # c == 16 * (conv(pred) - conv(target)); the 1/256 is folded into the wrapper scale.
    # Reduce only along the batch (sublane) axis -> lane-dense unmasked store; the
    # cross-step reduction happens in the wrapper (keeps the grid axis "parallel").
    partial_row = jnp.sum(c * c, axis=0, keepdims=True)      # (1, flat)
    out_ref[...] = partial_row[None, :, :]                    # (1, 1, flat)


def _boundary_masks(height, width):
    """(4, H*W) f32 validity of the left/right/up/down neighbour per flattened pixel."""
    idx = np.arange(height * width)
    col = idx % width
    row = idx // width
    masks = np.stack([col > 0, col < width - 1, row > 0, row < height - 1])
    return jnp.asarray(masks.astype(np.float32))


def _vmem_limit_bytes():
    """Scoped-VMEM limit derived from the chip: ~3/4 of physical, capped at 96 MiB
    (=> <= 48 MiB on v7x's 64 MiB VMEM, 96 MiB on v5e/v6e's 128 MiB)."""
    capacity = 64 * 1024 * 1024  # conservative fallback (v7x-sized)
    try:
        capacity = int(pltpu.get_tpu_info().vmem_capacity_bytes)
    except Exception:
        pass
    return min(capacity * 3 // 4, 96 * 1024 * 1024)


def _pick_batch_tile(n, flat, itemsize, live_budget_bytes):
    """Images per grid step such that the live VMEM per step (2 inputs x 2 pipeline
    buffers + ~6 block-sized f32 intermediates) stays within live_budget_bytes."""
    per_elem_bytes = 2 * 2 * itemsize + 6 * 4
    max_rows = max(1, live_budget_bytes // (per_elem_bytes * flat))
    if n <= 8:
        # TODO(synk): if even a single image exceeds the budget (huge H*W), tile the
        # flattened pixel axis into strips with a `width`-element halo on each side.
        return n
    bt = n if max_rows >= n else max(8, (max_rows // 8) * 8)
    if bt >= n:
        # Keep >= 2 grid steps so the "parallel" axis can shard across v7x's 2 TCs.
        bt = ((n + 1) // 2 + 7) // 8 * 8
    return bt


def gaussian_mse(pred, target):
    """pred, target: (N, 1, H, W) arrays. Returns the scalar float32 Gaussian-MSE loss."""
    assert pred.shape == target.shape
    n, c, h, w = pred.shape
    assert c == 1, "Gaussian_Kernel has a single input channel"
    flat = h * w

    # Metadata-only reshape (row-major contiguous): pixels land on the lane axis.
    x = pred.reshape(n, flat)
    y = target.reshape(n, flat)

    vmem_limit = _vmem_limit_bytes()
    live_budget = min(16 * 1024 * 1024, vmem_limit // 4)
    b_tile = _pick_batch_tile(n, flat, jnp.dtype(x.dtype).itemsize, live_budget)
    n_steps = -(-n // b_tile)

    masks = _boundary_masks(h, w)
    kernel = functools.partial(_gmse_partial_kernel, width=w, n_images=n, b_tile=b_tile)

    partials = pl.pallas_call(
        kernel,
        out_shape=jax.ShapeDtypeStruct((n_steps, 1, flat), jnp.float32),
        grid_spec=pltpu.PrefetchScalarGridSpec(
            num_scalar_prefetch=0,
            grid=(n_steps,),
            in_specs=[
                pl.BlockSpec((4, flat), lambda b: (0, 0)),          # boundary masks
                pl.BlockSpec((b_tile, flat), lambda b: (b, 0)),     # pred tile
                pl.BlockSpec((b_tile, flat), lambda b: (b, 0)),     # target tile
            ],
            out_specs=pl.BlockSpec((1, 1, flat), lambda b: (b, 0, 0)),
        ),
        compiler_params=pltpu.CompilerParams(
            dimension_semantics=("parallel",),
            vmem_limit_bytes=vmem_limit,
        ),
    )(masks, x, y)

    # loss = mean((conv_p - conv_t)^2); fold the Gaussian kernel's (1/16)^2 and the
    # MSE 'mean' normalization into a single scalar applied after the final reduction.
    scale = 1.0 / (256.0 * float(n * c * h * w))
    return jnp.sum(partials) * jnp.float32(scale)


def _reference_gaussian_mse(pred, target):
    """Pure-JAX reference for sanity checking."""
    g = jnp.array(_GAUSSIAN_3x3, jnp.float32).reshape(1, 1, 3, 3)
    conv = lambda t: jax.lax.conv_general_dilated(
        t.astype(jnp.float32), g, window_strides=(1, 1), padding=((1, 1), (1, 1)),
        dimension_numbers=("NCHW", "OIHW", "NCHW"))
    d = conv(pred) - conv(target)
    return jnp.mean(d * d)


if __name__ == "__main__":
    key = jax.random.PRNGKey(0)
    k1, k2, k3, k4 = jax.random.split(key, 4)

    # Small shapes consistent with the module: N=2, C=1 (single-channel conv), 16x16.
    pred = jax.random.normal(k1, (2, 1, 16, 16), dtype=jnp.float32)
    target = jax.random.normal(k2, (2, 1, 16, 16), dtype=jnp.float32)
    loss = gaussian_mse(pred, target)
    jax.block_until_ready(loss)
    ref = _reference_gaussian_mse(pred, target)
    assert jnp.allclose(loss, ref, rtol=1e-5, atol=1e-6), (loss, ref)

    # Also exercise the multi-step grid + cdiv tail-masking path (N not a tile multiple).
    pred2 = jax.random.normal(k3, (20, 1, 16, 16), dtype=jnp.float32)
    target2 = jax.random.normal(k4, (20, 1, 16, 16), dtype=jnp.float32)
    loss2 = gaussian_mse(pred2, target2)
    jax.block_until_ready(loss2)
    ref2 = _reference_gaussian_mse(pred2, target2)
    assert jnp.allclose(loss2, ref2, rtol=1e-5, atol=1e-6), (loss2, ref2)

    print("KERNEL_OK")
</pallas_src>

<mosaic_0001>
module attributes {stable_mosaic.version = 11 : i64} {
  func.func @_gmse_partial_kernel(%arg0: i32, %arg1: memref<4x256xf32, #tpu.memory_space<vmem>>, %arg2: memref<2x256xf32, #tpu.memory_space<vmem>>, %arg3: memref<2x256xf32, #tpu.memory_space<vmem>>, %arg4: memref<1x1x256xf32, #tpu.memory_space<vmem>>) attributes {dimension_semantics = [#tpu.dimension_semantics<parallel>], iteration_bounds = array<i64: 1>, scalar_prefetch = 0 : i64, scratch_operands = 0 : i64, tpu.core_type = #tpu.core_type<tc>, window_params = [{pipeline_mode = #tpu.pipeline_mode<synchronous>, transform_indices = @transform_0, window_bounds = array<i64: 4, 256>}, {transform_indices = @transform_1, window_bounds = array<i64: 2, 256>}, {transform_indices = @transform_2, window_bounds = array<i64: 2, 256>}, {transform_indices = @transform_3, window_bounds = array<i64: 1, 1, 256>}]} {
    %c0 = arith.constant 0 : index
    %c0_0 = arith.constant 0 : index
    %0 = vector.load %arg2[%c0, %c0_0] : memref<2x256xf32, #tpu.memory_space<vmem>>, vector<2x256xf32>
    %c0_1 = arith.constant 0 : index
    %c0_2 = arith.constant 0 : index
    %1 = vector.load %arg3[%c0_1, %c0_2] : memref<2x256xf32, #tpu.memory_space<vmem>>, vector<2x256xf32>
    %2 = arith.subf %0, %1 : vector<2x256xf32>
    %c0_3 = arith.constant 0 : index
    %c0_4 = arith.constant 0 : index
    %3 = vector.load %arg1[%c0_3, %c0_4] : memref<4x256xf32, #tpu.memory_space<vmem>>, vector<1x256xf32>
    %c1 = arith.constant 1 : index
    %c0_5 = arith.constant 0 : index
    %4 = vector.load %arg1[%c1, %c0_5] : memref<4x256xf32, #tpu.memory_space<vmem>>, vector<1x256xf32>
    %c2 = arith.constant 2 : index
    %c0_6 = arith.constant 0 : index
    %5 = vector.load %arg1[%c2, %c0_6] : memref<4x256xf32, #tpu.memory_space<vmem>>, vector<1x256xf32>
    %c3 = arith.constant 3 : index
    %c0_7 = arith.constant 0 : index
    %6 = vector.load %arg1[%c3, %c0_7] : memref<4x256xf32, #tpu.memory_space<vmem>>, vector<1x256xf32>
    %7 = arith.addf %2, %2 : vector<2x256xf32>
    %c1_i32 = arith.constant 1 : i32
    %8 = tpu.dynamic_rotate %2 by %c1_i32 dim 1 : vector<2x256xf32>, i32 -> vector<2x256xf32>
    %9 = vector.broadcast %3 : vector<1x256xf32> to vector<2x256xf32>
    %10 = arith.mulf %9, %8 : vector<2x256xf32>
    %11 = arith.addf %7, %10 : vector<2x256xf32>
    %c255_i32 = arith.constant 255 : i32
    %12 = tpu.dynamic_rotate %2 by %c255_i32 dim 1 : vector<2x256xf32>, i32 -> vector<2x256xf32>
    %13 = vector.broadcast %4 : vector<1x256xf32> to vector<2x256xf32>
    %14 = arith.mulf %13, %12 : vector<2x256xf32>
    %15 = arith.addf %11, %14 : vector<2x256xf32>
    %16 = arith.addf %15, %15 : vector<2x256xf32>
    %c16_i32 = arith.constant 16 : i32
    %17 = tpu.dynamic_rotate %15 by %c16_i32 dim 1 : vector<2x256xf32>, i32 -> vector<2x256xf32>
    %18 = vector.broadcast %5 : vector<1x256xf32> to vector<2x256xf32>
    %19 = arith.mulf %18, %17 : vector<2x256xf32>
    %20 = arith.addf %16, %19 : vector<2x256xf32>
    %c240_i32 = arith.constant 240 : i32
    %21 = tpu.dynamic_rotate %15 by %c240_i32 dim 1 : vector<2x256xf32>, i32 -> vector<2x256xf32>
    %22 = vector.broadcast %6 : vector<1x256xf32> to vector<2x256xf32>
    %23 = arith.mulf %22, %21 : vector<2x256xf32>
    %24 = arith.addf %20, %23 : vector<2x256xf32>
    %25 = arith.mulf %24, %24 : vector<2x256xf32>
    %cst = arith.constant dense<0.000000e+00> : vector<256xf32>
    %26 = vector.multi_reduction <add>, %25, %cst [0] : vector<2x256xf32> to vector<256xf32>
    %27 = vector.shape_cast %26 : vector<256xf32> to vector<1x256xf32>
    %28 = vector.shape_cast %27 : vector<1x256xf32> to vector<1x1x256xf32>
    %c0_8 = arith.constant 0 : index
    %c0_9 = arith.constant 0 : index
    %c0_10 = arith.constant 0 : index
    %29 = vector.load %arg4[%c0_8, %c0_9, %c0_10] : memref<1x1x256xf32, #tpu.memory_space<vmem>>, vector<1x1x256xf32>
    tpu.vector_store %arg4[%c0_8, %c0_9, %c0_10], %28 {strides = array<i32>} : memref<1x1x256xf32, #tpu.memory_space<vmem>>, vector<1x1x256xf32>,
    return
  }
  func.func @transform_0(%arg0: i32) -> (i32, i32) {
    %c0_i32 = arith.constant 0 : i32
    %c0_i32_0 = arith.constant 0 : i32
    %c0_i32_1 = arith.constant 0 : i32
    return %c0_i32, %c0_i32_0 : i32, i32
  }
  func.func @transform_1(%arg0: i32) -> (i32, i32) {
    %c0_i32 = arith.constant 0 : i32
    %c0_i32_0 = arith.constant 0 : i32
    return %arg0, %c0_i32 : i32, i32
  }
  func.func @transform_2(%arg0: i32) -> (i32, i32) {
    %c0_i32 = arith.constant 0 : i32
    %c0_i32_0 = arith.constant 0 : i32
    return %arg0, %c0_i32 : i32, i32
  }
  func.func @transform_3(%arg0: i32) -> (i32, i32, i32) {
    %c0_i32 = arith.constant 0 : i32
    %c0_i32_0 = arith.constant 0 : i32
    %c0_i32_1 = arith.constant 0 : i32
    return %arg0, %c0_i32, %c0_i32_0 : i32, i32, i32
  }
}

</mosaic_0001>

<bundles_post_ra>
// kernel: tpu_custom_call.1
= control target key start
LH: loop header
LB: loop body
LE: loop exit
PB: predicated region body
PF: predicated region fallthrough
CT: control target
= control target key end

     0   :  { %8 = vsyncpa [#allocation3], 0  ;;  %s436_s0 = inlined_call_operand.hbm [shape: f32[4,256], index: 0, kind: input, shape index: {}]   ;;  %s437_s1 = inlined_call_operand.hbm [shape: f32[2,256], index: 1, kind: input, shape index: {}]   ;;  %s438_s2 = inlined_call_operand.vmem [shape: f32[2,256], index: 2, kind: input, shape index: {}]   ;;  %s439_s3 = inlined_call_operand.hbm [shape: f32[1,1,256], index: 3, kind: output, shape index: {}]  }
   0x1   :  { %9 = vsyncpa [#allocation6], 0 }
   0x2   :  { %10 = vsyncpa [#allocation4], 0  ;;  %s350_s12 = smov [#allocation2]   ;;  %s351_s14 = smov [#allocation5]  }
   0x3   :  { %s17_s13 = sshll.u32 %s350_s12, 4  ;;  %s27_s15 = sshll.u32 %s351_s14, 4  ;;  %s18_s13 = int_to_ptr.vmem [resolvable:$true] %s17_s13  ;;  %s28_s15 = int_to_ptr.vmem [resolvable:$true] %s27_s15 }
   0x4   :  { %s278_s18 = scalar_lea.hbm %s436_s0, 128 }
   0x5   :  { %p279_p0 = scmp.ne.s32.totalorder %s436_s0, %s278_s18  ;;  %p282_p1 = scmp.lt.u32.totalorder %s278_s18, %s436_s0 }
   0x7   :  { %p284_p2 = pnand %p282_p1, %p279_p0 }
   0x9   :  { %287 = shalt.err (!%p284_p2)
}
   0xa   :  { %s288_s23 = scalar_lea.vmem %s18_s13, 128  ;;  %p293_p4 = scmp.lt.s32.totalorder %s18_s13, %s18_s13 }
   0xb   :  { %p289_p3 = scmp.ne.s32.totalorder %s18_s13, %s288_s23  ;;  %p294_p5 = scmp.lt.s32.totalorder %s288_s23, %s288_s23 }
   0xd   :  { %p295_p6 = por %p294_p5, %p293_p4 }
   0xf   :  { %p296_p7 = pnand %p295_p6, %p289_p3 }
  0x11   :  { %299 = shalt.err (!%p296_p7)
}
  0x12   :  { %20 = dma.hbm_to_vmem [thread:$0]  %s436_s0, 128, %s18_s13, [#allocation3]  }
  0x13   :  { %s300_s28 = scalar_lea.hbm %s437_s1, 64 }
  0x14   :  { %p301_p8 = scmp.ne.s32.totalorder %s437_s1, %s300_s28  ;;  %p304_p9 = scmp.lt.u32.totalorder %s300_s28, %s437_s1 }
  0x16   :  { %p306_p10 = pnand %p304_p9, %p301_p8 }
  0x18   :  { %309 = shalt.err (!%p306_p10)
}
  0x19   :  { %s310_s6 = scalar_lea.vmem %s28_s15, 64  ;;  %p315_p12 = scmp.lt.s32.totalorder %s28_s15, %s28_s15 }
  0x1a   :  { %p311_p11 = scmp.ne.s32.totalorder %s28_s15, %s310_s6  ;;  %p316_p13 = scmp.lt.s32.totalorder %s310_s6, %s310_s6 }
  0x1c   :  { %p317_p0 = por %p316_p13, %p315_p12 }
  0x1e   :  { %p318_p1 = pnand %p317_p0, %p311_p11 }
  0x20   :  { %321 = shalt.err (!%p318_p1)
}
  0x21   :  { %30 = dma.hbm_to_vmem [thread:$0]  %s437_s1, 64, %s28_s15, [#allocation6]  }
  0x22   :  { %344 = dma.done.wait [#allocation3], 128  }
  0x23   :  { %345 = vsyncadd [#allocation3], 4294967168 }
  0x24   :  { %346 = dma.done.wait [#allocation6], 64  }
  0x25   :  { %347 = vsyncadd [#allocation6], 4294967232  ;;  %v54_v0 = vlaneseq  ;;  %v352_v1 = vmov 1983009808   ;;  %v39_v6 = vld [vmem:[#allocation5] sm:$0xf] }
  0x26   :  { %v52_v2 = vunpack.c.l.s4 %v352_v1  ;;  %v40_v7 = vld [vmem:[%s438_s2] sm:$0xf]  ;;  %s353_s1 = smov 127   ;;  %s354_s10 = smov 1   ;;  %vm215_vm4 = vcmask 1041408  }
  0x27   :  { %v404_v3 = vshrl.u32 %v54_v0, 7  ;;  %v41_v8 = vsub.f32 %v39_v6, %v40_v7  ;;  %v66_v11 = vand.u32 127, %v54_v0  ;;  %v44_v14 = vld [vmem:[#allocation2 + $0x1] ss:$4 sm:$0x3]  ;;  %s355_s2 = smov 16  }
  0x28   :  { %v53_v4 = vunpack.c.0.s8 %v52_v2  ;;  %v42_v15 = vld [vmem:[#allocation2] ss:$4 sm:$0x3]  ;;  %s356_s11 = smov 112   ;;  %s358_s12 = smov [#allocation7]   ;;  %vm250_vm5 = vcmp.lt.s32.totalorder %v54_v0, 256 }
  0x29   :  { %v73_v12 = vsub.s32 0, %v404_v3  ;;  %v77_v13 = vsub.s32 1, %v404_v3  ;;  %vm99_vm0 = vcmp.lt.s32.totalorder %v66_v11, 127  ;;  %vm67_vm1 = vcmp.lt.s32.totalorder %v66_v11, 1  ;;  %s259_s13 = sshll.u32 %s358_s12, 4  ;;  %s260_s13 = int_to_ptr.vmem [resolvable:$true] %s259_s13 }
  0x2a   :  { %v407_v5 = vsub.s32 %v53_v4, %v404_v3  ;;  %v49_v32 = vadd.f32 %v41_v8, %v41_v8  ;;  %v46_v41 = vld [vmem:[#allocation2 + $0x2] ss:$4 sm:$0x3]  ;;  %vm143_vm2 = vcmp.lt.s32.totalorder %v66_v11, 16  ;;  %vm175_vm3 = vcmp.lt.s32.totalorder %v66_v11, 112  ;;  %s322_s14 = scalar_lea.vmem %s260_s13, 32  ;;  %p327_p3 = scmp.lt.s32.totalorder %s260_s13, %s260_s13 }
  0x2b   :  { %v106_v18 = vrot.slane %v44_v14, %v73_v12  ;;  %v110_v19 = vrot.slane %v44_v14, %v77_v13  ;;  %v74_v20 = vrot.slane %v42_v15, %v73_v12  ;;  %v78_v21 = vrot.slane %v42_v15, %v77_v13  ;;  %v48_v45 = vld [vmem:[#allocation2 + $0x3] ss:$4 sm:$0x3]  ;;  %p323_p2 = scmp.ne.s32.totalorder %s260_s13, %s322_s14  ;;  %p328_p4 = scmp.lt.s32.totalorder %s322_s14, %s322_s14 }
  0x2c   :  { %v57_v9 = vrot.slane %v41_v8, %v407_v5  ;;  %v150_v43 = vrot.slane %v46_v41, %v73_v12  ;;  %v154_v44 = vrot.slane %v46_v41, %v77_v13  ;;  %v182_v51 = vrot.slane %v48_v45, %v73_v12 }
  0x2d   :  { %v186_v52 = vrot.slane %v48_v45, %v77_v13  ;;  %v357_v15 = vmov 1966171168   ;;  %p329_p5 = por %p328_p4, %p327_p3 }
  0x2e   :  { %95 = vrot.lane.b32.xlu1 %v57_v9, %s353_s1  ;;  %61 = vrot.lane.b32.xlu0 %v57_v9, %s354_s10  ;;  %v58_v10 = vcombine.high %v57_v9, %v57_v9 }
  0x2f   :  { %p330_p6 = pnand %p329_p5, %p323_p2 }
  0x32   :  { %97 = vrot.lane.b32.xlu1 %v58_v10, %s353_s1  ;;  %63 = vrot.lane.b32.xlu0 %v58_v10, %s354_s10 }
  0xa0   :  { %v96_v16 = vpop.permute.xlu1 %95  ;;  %v62_v17 = vpop.permute.xlu0 %61 }
  0xa4   :  { %v98_v22 = vpop.permute.xlu1 %97  ;;  %v64_v23 = vpop.permute.xlu0 %63 }
  0xa5   :  { %v100_v24 = vsel %vm99_vm0, %v96_v16, %v98_v22  ;;  %v101_v25 = vsel %vm99_vm0, %v98_v22, %v96_v16  ;;  %v68_v26 = vsel %vm67_vm1, %v62_v17, %v64_v23  ;;  %v69_v27 = vsel %vm67_vm1, %v64_v23, %v62_v17 }
  0xa6   :  { %v113_v28 = vmul.f32 %v106_v18, %v100_v24  ;;  %v114_v29 = vmul.f32 %v110_v19, %v101_v25  ;;  %v81_v30 = vmul.f32 %v74_v20, %v69_v27  ;;  %v82_v31 = vmul.f32 %v78_v21, %v68_v26 }
  0xa7   :  { %v234_v16 = vunpack.c.l.s4 %v357_v15 }
  0xa8   :  { %v117_v33 = vcombine.low %v113_v28, %v114_v29  ;;  %v85_v34 = vcombine.low %v81_v30, %v82_v31 }
  0xa9   :  { %v235_v21 = vunpack.c.0.s8 %v234_v16 }
  0xaa   :  { %v92_v35 = vrot.slane %v85_v34, %v407_v5  ;;  %v124_v36 = vrot.slane %v117_v33, %v407_v5 }
  0xac   :  { %v94_v37 = vadd.f32 %v92_v35, %v49_v32 }
  0xae   :  { %v126_v38 = vadd.f32 %v124_v36, %v94_v37 }
  0xb0   :  { %v135_v39 = vrot.slane %v126_v38, %v407_v5  ;;  %v127_v61 = vadd.f32 %v126_v38, %v126_v38 }
  0xb2   :  { %139 = vrot.lane.b32.xlu0 %v135_v39, %s355_s2  ;;  %v136_v40 = vcombine.high %v135_v39, %v135_v39 }
  0xb4   :  { %141 = vrot.lane.b32.xlu1 %v136_v40, %s355_s2 }
  0xb6   :  { %171 = vrot.lane.b32.xlu0 %v135_v39, %s356_s11 }
  0xb8   :  { %173 = vrot.lane.b32.xlu1 %v136_v40, %s356_s11 }
 0x124   :  { %v140_v42 = vpop.permute.xlu0 %139 }
 0x126   :  { %v142_v46 = vpop.permute.xlu1 %141 }
 0x127   :  { %v144_v47 = vsel %vm143_vm2, %v140_v42, %v142_v46  ;;  %v145_v48 = vsel %vm143_vm2, %v142_v46, %v140_v42 }
 0x128   :  { %v157_v49 = vmul.f32 %v150_v43, %v145_v48  ;;  %v158_v50 = vmul.f32 %v154_v44, %v144_v47  ;;  %v172_v54 = vpop.permute.xlu0 %171 }
 0x12a   :  { %v161_v53 = vcombine.low %v157_v49, %v158_v50  ;;  %v174_v55 = vpop.permute.xlu1 %173 }
 0x12b   :  { %v176_v56 = vsel %vm175_vm3, %v172_v54, %v174_v55  ;;  %v177_v57 = vsel %vm175_vm3, %v174_v55, %v172_v54 }
 0x12c   :  { %v168_v58 = vrot.slane %v161_v53, %v407_v5  ;;  %v189_v59 = vmul.f32 %v182_v51, %v176_v56  ;;  %v190_v60 = vmul.f32 %v186_v52, %v177_v57 }
 0x12e   :  { %v193_v62 = vcombine.low %v189_v59, %v190_v60  ;;  %v170_v63 = vadd.f32 %v168_v58, %v127_v61 }
 0x130   :  { %v200_v1 = vrot.slane %v193_v62, %v407_v5 }
 0x132   :  { %v202_v2 = vadd.f32 %v200_v1, %v170_v63 }
 0x134   :  { %v203_v4 = vmul.f32 %v202_v2, %v202_v2 }
 0x136   :  { %v211_v6 = vrot.slane %v203_v4, %v407_v5  ;;  %v238_v5 = vsub.s32 %v235_v21, %v404_v3 }
 0x138   :  { %v212_v7 = vcombine.high %v211_v6, %v211_v6  ;;  %v216_v8 = vsel %vm215_vm4, %v211_v6, 0.0 }
 0x139   :  { %v217_v9 = vrot.slane %v216_v8, 4 }
 0x13a   :  { %v223_v10 = vsel %vm215_vm4, %v212_v7, 0.0 }
 0x13b   :  { %v218_v11 = vadd.f32 %v217_v9, %v216_v8  ;;  %v224_v12 = vrot.slane %v223_v10, 4 }
 0x13d   :  { %v219_v13 = vrot.slane %v218_v11, 2  ;;  %v225_v14 = vadd.f32 %v224_v12, %v223_v10 }
 0x13f   :  { %v220_v17 = vadd.f32 %v219_v13, %v218_v11  ;;  %v226_v18 = vrot.slane %v225_v14, 2 }
 0x141   :  { %v221_v19 = vrot.slane %v220_v17, 1  ;;  %v227_v20 = vadd.f32 %v226_v18, %v225_v14 }
 0x143   :  { %v228_v22 = vrot.slane %v227_v20, 1  ;;  %v222_v23 = vadd.f32 %v221_v19, %v220_v17 }
 0x145   :  { %v229_v24 = vadd.f32 %v228_v22, %v227_v20 }
 0x147   :  { %v232_v25 = vcombine.low %v222_v23, %v229_v24 }
 0x149   :  { %v239_v26 = vrot.slane %v232_v25, %v238_v5 }
 0x14b   :  { %v246_v27 = vrot.slane %v239_v26, %v238_v5 }
 0x14d   :  { %252 = vst.msk [vmem:[#allocation7] sm:$0x3] %vm250_vm5, %v246_v27 }
 0x14e   :  { %333 = shalt.err (!%p330_p6)
}
 0x14f   :  { %s334_s17 = scalar_lea.hbm %s439_s3, 32 }
 0x150   :  { %p335_p7 = scmp.ne.s32.totalorder %s439_s3, %s334_s17  ;;  %p338_p8 = scmp.lt.u32.totalorder %s334_s17, %s439_s3 }
 0x152   :  { %p340_p9 = pnand %p338_p8, %p335_p7 }
 0x154   :  { %343 = shalt.err (!%p340_p9)
}
 0x155   :  { %262 = dma.vmem_to_hbm [thread:$0]  %s260_s13, 32, %s439_s3, [#allocation4]  }
 0x156   :  { %348 = dma.done.wait [#allocation4], 32  }
 0x157   :  { %349 = vsyncadd [#allocation4], 4294967264 }
 0x158   :  { %266 = vsyncpa [#allocation3], 1 }
 0x159   :  { %267 = vsyncpa [#allocation6], 1 }
 0x15a   :  { %268 = vsyncpa [#allocation4], 1 }

</bundles_post_ra>
